<compile_context>
chip_gen: v5e
topology: v5e:2x2
jax: 0.10.0
libtpu: 0.0.40
codegen_flags: <defaults>
</compile_context>

<pallas_src>
import functools

import jax
import jax.numpy as jnp
from jax.experimental import pallas as pl
from jax.experimental.pallas import tpu as pltpu

LANE = 128
SUBLANE = 8
NEG_INF = -1e30


def _round_up(n, m):
    return ((n + m - 1) // m) * m


# ---------------------------------------------------------------------------
# Fused MLP kernel (one batch tile per grid step, all layers in-kernel)
# ---------------------------------------------------------------------------
def _make_mlp_kernel(n_layers):
    def kernel(x_ref, *refs):
        # refs = (w0, b0, w1, b1, ..., w_{L-1}, b_{L-1}, o_ref)
        o_ref = refs[2 * n_layers]
        y = x_ref[...]  # [TB, IN_pad] f32
        for i in range(n_layers):
            w = refs[2 * i][...]        # [IN_pad, OUT_pad]  bf16, pre-transposed
            b = refs[2 * i + 1][...]    # [1, OUT_pad]       f32
            # bf16 operands feed the MXU at full rate; accumulate in f32.
            z = jnp.dot(y.astype(jnp.bfloat16), w,
                        preferred_element_type=jnp.float32) + b
            if i < n_layers - 1:
                y = jnp.tanh(z)
            else:
                # softmax over dim=1; padded lanes carry a -1e30 bias -> exp()=0
                z = z - jnp.max(z, axis=1, keepdims=True)
                e = jnp.exp(z)
                y = e / jnp.sum(e, axis=1, keepdims=True)   # exact divide
        o_ref[...] = y.astype(o_ref.dtype)

    return kernel


# ---------------------------------------------------------------------------
# Parameter packing (done once, outside the hot path)
# ---------------------------------------------------------------------------
def prepare_params(params):
    """Transpose PyTorch-convention weights to [IN, OUT], pad features to 128,
    and store weights as bf16 (biases stay f32, including the -1e30 softmax
    pad bias on the final layer)."""
    packed = []
    n = len(params)
    for i, (w, b) in enumerate(params):
        out_f, in_f = w.shape
        in_p = _round_up(in_f, LANE)
        out_p = _round_up(out_f, LANE)
        wt = (jnp.zeros((in_p, out_p), jnp.float32)
              .at[:in_f, :out_f].set(w.T)
              .astype(jnp.bfloat16))
        pad_val = NEG_INF if i == n - 1 else 0.0
        bt = (jnp.full((1, out_p), pad_val, jnp.float32)
              .at[0, :out_f].set(b.reshape(-1)))
        packed.append((wt, bt))
    return packed


def _pick_batch_tile(batch):
    # Target >=4 grid steps (>=2 per TensorCore on v7x) so both cores have work
    # and the DMA pipeline overlaps; cap at 1024 rows to amortize the ~0.35us
    # per-step overhead for large batches.
    tb = _round_up(max(batch // 4, 1), SUBLANE)
    return int(min(1024, max(SUBLANE, tb)))


def _vmem_limit_bytes(tb, packed_params, in_p, out_p):
    # Weights/biases are single-buffered (Buffered(1)) -> count once.
    wt_bytes = sum(int(w.size) * w.dtype.itemsize + int(b.size) * b.dtype.itemsize
                   for w, b in packed_params)
    widest = max([in_p, out_p] + [w.shape[1] for w, _ in packed_params])
    # Streamed input/output tiles are double-buffered; plus live activations.
    act_bytes = 2 * (tb * in_p + tb * out_p) * 4 + 3 * tb * widest * 4
    need = wt_bytes + act_bytes + (4 << 20)  # 4 MiB headroom
    try:
        cap = int(pltpu.get_tpu_info().vmem_capacity_bytes) * 3 // 4
    except Exception:
        cap = 96 << 20  # conservative fallback (v5e/v6e usable budget)
    return int(min(max(need, 16 << 20), cap))


def _resident_spec(shape):
    # Constant index_map: block never changes across batch tiles; Buffered(1)
    # stops the pipeliner from allocating a pointless second buffer.
    return pl.BlockSpec(shape, lambda i: (0, 0), pipeline_mode=pl.Buffered(1))


# ---------------------------------------------------------------------------
# Forward pass
# ---------------------------------------------------------------------------
@functools.partial(jax.jit, static_argnames=("out_features",))
def mlp_forward(x, packed_params, out_features):
    batch, in_f = x.shape
    n_layers = len(packed_params)
    in_p = packed_params[0][0].shape[0]
    out_p = packed_params[-1][0].shape[1]

    tb = _pick_batch_tile(batch)
    batch_p = _round_up(batch, tb)

    # Lane-dense, sublane-aligned input slab; skip the pad copy when aligned.
    if batch_p == batch and in_p == in_f:
        xp = x.astype(jnp.float32)
    else:
        xp = jnp.zeros((batch_p, in_p), jnp.float32).at[:batch, :in_f].set(x)

    grid = (batch_p // tb,)
    flat_params = []
    in_specs = [pl.BlockSpec((tb, in_p), lambda i: (i, 0))]
    for w, b in packed_params:
        flat_params += [w, b]
        in_specs.append(_resident_spec(w.shape))
        in_specs.append(_resident_spec(b.shape))
    out_specs = pl.BlockSpec((tb, out_p), lambda i: (i, 0))

    out = pl.pallas_call(
        _make_mlp_kernel(n_layers),
        out_shape=jax.ShapeDtypeStruct((batch_p, out_p), jnp.float32),
        grid_spec=pltpu.PrefetchScalarGridSpec(
            num_scalar_prefetch=0,
            grid=grid,
            in_specs=in_specs,
            out_specs=out_specs,
        ),
        compiler_params=pltpu.CompilerParams(
            dimension_semantics=("parallel",),
            vmem_limit_bytes=_vmem_limit_bytes(tb, packed_params, in_p, out_p),
        ),
    )(xp, *flat_params)

    if batch_p == batch and out_p == out_features:
        return out
    return out[:batch, :out_features]


# ---------------------------------------------------------------------------
# Parameters (PyTorch nn.Linear convention: w [out, in], b [out])
# ---------------------------------------------------------------------------
def init_mlp_params(key, shape):
    """Mirror nn.Linear default init (uniform +-1/sqrt(fan_in))."""
    params = []
    for i in range(len(shape) - 1):
        fan_in, fan_out = shape[i], shape[i + 1]
        key, kw, kb = jax.random.split(key, 3)
        bound = 1.0 / jnp.sqrt(jnp.float32(fan_in))
        w = jax.random.uniform(kw, (fan_out, fan_in), jnp.float32,
                               minval=-bound, maxval=bound)
        b = jax.random.uniform(kb, (fan_out,), jnp.float32,
                               minval=-bound, maxval=bound)
        params.append((w, b))
    return params


# Pure-JAX reference (matches the PyTorch forward).
def mlp_forward_ref(x, params):
    n_layers = len(params)
    y = x
    for i, (w, b) in enumerate(params):
        z = y @ w.T + b.reshape(1, -1)
        y = jnp.tanh(z) if i < n_layers - 1 else jax.nn.softmax(z, axis=1)
    return y


# ---------------------------------------------------------------------------
if __name__ == "__main__":
    key = jax.random.PRNGKey(0)

    # MLP architecture: input 16 -> hidden 32 -> hidden 32 -> output 8
    shape = [16, 32, 32, 8]
    batch = 4

    key, kx, kp = jax.random.split(key, 3)
    x = jax.random.normal(kx, (batch, shape[0]), jnp.float32)
    params = init_mlp_params(kp, shape)
    packed = prepare_params(params)  # transpose + lane-pad + bf16, once

    out = mlp_forward(x, packed, out_features=shape[-1])
    out = jax.block_until_ready(out)

    ref = mlp_forward_ref(x, params)
    assert out.shape == (batch, shape[-1])
    # Tolerance accounts for bf16 matmul operands (accumulation stays f32).
    assert jnp.allclose(out, ref, atol=2e-2, rtol=2e-2), "mismatch vs reference"
    # Exact softmax divide -> rows sum to 1 to f32 precision.
    assert jnp.allclose(jnp.sum(out, axis=1), jnp.ones((batch,)), atol=1e-3)

    print("KERNEL_OK")
</pallas_src>

<mosaic_0001>
module attributes {stable_mosaic.version = 11 : i64} {
  func.func @kernel(%arg0: i32, %arg1: memref<8x128xf32, #tpu.memory_space<vmem>>, %arg2: memref<128x128xbf16, #tpu.memory_space<vmem>>, %arg3: memref<1x128xf32, #tpu.memory_space<vmem>>, %arg4: memref<128x128xbf16, #tpu.memory_space<vmem>>, %arg5: memref<1x128xf32, #tpu.memory_space<vmem>>, %arg6: memref<128x128xbf16, #tpu.memory_space<vmem>>, %arg7: memref<1x128xf32, #tpu.memory_space<vmem>>, %arg8: memref<8x128xf32, #tpu.memory_space<vmem>>) attributes {dimension_semantics = [#tpu.dimension_semantics<parallel>], iteration_bounds = array<i64: 1>, scalar_prefetch = 0 : i64, scratch_operands = 0 : i64, tpu.core_type = #tpu.core_type<tc>, window_params = [{transform_indices = @transform_0, window_bounds = array<i64: 8, 128>}, {pipeline_mode = #tpu.pipeline_mode<synchronous>, transform_indices = @transform_1, window_bounds = array<i64: 128, 128>}, {pipeline_mode = #tpu.pipeline_mode<synchronous>, transform_indices = @transform_2, window_bounds = array<i64: 1, 128>}, {pipeline_mode = #tpu.pipeline_mode<synchronous>, transform_indices = @transform_3, window_bounds = array<i64: 128, 128>}, {pipeline_mode = #tpu.pipeline_mode<synchronous>, transform_indices = @transform_4, window_bounds = array<i64: 1, 128>}, {pipeline_mode = #tpu.pipeline_mode<synchronous>, transform_indices = @transform_5, window_bounds = array<i64: 128, 128>}, {pipeline_mode = #tpu.pipeline_mode<synchronous>, transform_indices = @transform_6, window_bounds = array<i64: 1, 128>}, {transform_indices = @transform_7, window_bounds = array<i64: 8, 128>}]} {
    %c0 = arith.constant 0 : index
    %c0_0 = arith.constant 0 : index
    %0 = vector.load %arg1[%c0, %c0_0] : memref<8x128xf32, #tpu.memory_space<vmem>>, vector<8x128xf32>
    %c0_1 = arith.constant 0 : index
    %c0_2 = arith.constant 0 : index
    %1 = vector.load %arg2[%c0_1, %c0_2] : memref<128x128xbf16, #tpu.memory_space<vmem>>, vector<128x128xbf16>
    %c0_3 = arith.constant 0 : index
    %c0_4 = arith.constant 0 : index
    %2 = vector.load %arg3[%c0_3, %c0_4] : memref<1x128xf32, #tpu.memory_space<vmem>>, vector<1x128xf32>
    %3 = arith.truncf %0 : vector<8x128xf32> to vector<8x128xbf16>
    %cst = arith.constant dense<0.000000e+00> : vector<8x128xf32>
    %4 = tpu.matmul %3, %1, %cst {dimension_numbers = #tpu.dot_dimension_numbers<[1], [0], [0], [1], [0, 0, 1, 1], [], []>} : vector<8x128xbf16>, vector<128x128xbf16>, vector<8x128xf32> -> vector<8x128xf32>
    %5 = vector.broadcast %2 : vector<1x128xf32> to vector<8x128xf32>
    %6 = arith.addf %4, %5 : vector<8x128xf32>
    %7 = math.tanh %6 : vector<8x128xf32>
    %c0_5 = arith.constant 0 : index
    %c0_6 = arith.constant 0 : index
    %8 = vector.load %arg4[%c0_5, %c0_6] : memref<128x128xbf16, #tpu.memory_space<vmem>>, vector<128x128xbf16>
    %c0_7 = arith.constant 0 : index
    %c0_8 = arith.constant 0 : index
    %9 = vector.load %arg5[%c0_7, %c0_8] : memref<1x128xf32, #tpu.memory_space<vmem>>, vector<1x128xf32>
    %10 = arith.truncf %7 : vector<8x128xf32> to vector<8x128xbf16>
    %cst_9 = arith.constant dense<0.000000e+00> : vector<8x128xf32>
    %11 = tpu.matmul %10, %8, %cst_9 {dimension_numbers = #tpu.dot_dimension_numbers<[1], [0], [0], [1], [0, 0, 1, 1], [], []>} : vector<8x128xbf16>, vector<128x128xbf16>, vector<8x128xf32> -> vector<8x128xf32>
    %12 = vector.broadcast %9 : vector<1x128xf32> to vector<8x128xf32>
    %13 = arith.addf %11, %12 : vector<8x128xf32>
    %14 = math.tanh %13 : vector<8x128xf32>
    %c0_10 = arith.constant 0 : index
    %c0_11 = arith.constant 0 : index
    %15 = vector.load %arg6[%c0_10, %c0_11] : memref<128x128xbf16, #tpu.memory_space<vmem>>, vector<128x128xbf16>
    %c0_12 = arith.constant 0 : index
    %c0_13 = arith.constant 0 : index
    %16 = vector.load %arg7[%c0_12, %c0_13] : memref<1x128xf32, #tpu.memory_space<vmem>>, vector<1x128xf32>
    %17 = arith.truncf %14 : vector<8x128xf32> to vector<8x128xbf16>
    %cst_14 = arith.constant dense<0.000000e+00> : vector<8x128xf32>
    %18 = tpu.matmul %17, %15, %cst_14 {dimension_numbers = #tpu.dot_dimension_numbers<[1], [0], [0], [1], [0, 0, 1, 1], [], []>} : vector<8x128xbf16>, vector<128x128xbf16>, vector<8x128xf32> -> vector<8x128xf32>
    %19 = vector.broadcast %16 : vector<1x128xf32> to vector<8x128xf32>
    %20 = arith.addf %18, %19 : vector<8x128xf32>
    %cst_15 = arith.constant dense<0xFF800000> : vector<8xf32>
    %21 = vector.multi_reduction <maximumf>, %20, %cst_15 [1] : vector<8x128xf32> to vector<8xf32>
    %22 = vector.shape_cast %21 : vector<8xf32> to vector<8x1xf32>
    %23 = vector.broadcast %22 : vector<8x1xf32> to vector<8x128xf32>
    %24 = arith.subf %20, %23 : vector<8x128xf32>
    %25 = math.exp %24 : vector<8x128xf32>
    %cst_16 = arith.constant dense<0.000000e+00> : vector<8xf32>
    %26 = vector.multi_reduction <add>, %25, %cst_16 [1] : vector<8x128xf32> to vector<8xf32>
    %27 = vector.shape_cast %26 : vector<8xf32> to vector<8x1xf32>
    %28 = vector.broadcast %27 : vector<8x1xf32> to vector<8x128xf32>
    %29 = arith.divf %25, %28 : vector<8x128xf32>
    %c0_17 = arith.constant 0 : index
    %c0_18 = arith.constant 0 : index
    %30 = vector.load %arg8[%c0_17, %c0_18] : memref<8x128xf32, #tpu.memory_space<vmem>>, vector<8x128xf32>
    tpu.vector_store %arg8[%c0_17, %c0_18], %29 {strides = array<i32>} : memref<8x128xf32, #tpu.memory_space<vmem>>, vector<8x128xf32>,
    return
  }
  func.func @transform_0(%arg0: i32) -> (i32, i32) {
    %c0_i32 = arith.constant 0 : i32
    %c0_i32_0 = arith.constant 0 : i32
    return %arg0, %c0_i32 : i32, i32
  }
  func.func @transform_1(%arg0: i32) -> (i32, i32) {
    %c0_i32 = arith.constant 0 : i32
    %c0_i32_0 = arith.constant 0 : i32
    %c0_i32_1 = arith.constant 0 : i32
    return %c0_i32, %c0_i32_0 : i32, i32
  }
  func.func @transform_2(%arg0: i32) -> (i32, i32) {
    %c0_i32 = arith.constant 0 : i32
    %c0_i32_0 = arith.constant 0 : i32
    %c0_i32_1 = arith.constant 0 : i32
    return %c0_i32, %c0_i32_0 : i32, i32
  }
  func.func @transform_3(%arg0: i32) -> (i32, i32) {
    %c0_i32 = arith.constant 0 : i32
    %c0_i32_0 = arith.constant 0 : i32
    %c0_i32_1 = arith.constant 0 : i32
    return %c0_i32, %c0_i32_0 : i32, i32
  }
  func.func @transform_4(%arg0: i32) -> (i32, i32) {
    %c0_i32 = arith.constant 0 : i32
    %c0_i32_0 = arith.constant 0 : i32
    %c0_i32_1 = arith.constant 0 : i32
    return %c0_i32, %c0_i32_0 : i32, i32
  }
  func.func @transform_5(%arg0: i32) -> (i32, i32) {
    %c0_i32 = arith.constant 0 : i32
    %c0_i32_0 = arith.constant 0 : i32
    %c0_i32_1 = arith.constant 0 : i32
    return %c0_i32, %c0_i32_0 : i32, i32
  }
  func.func @transform_6(%arg0: i32) -> (i32, i32) {
    %c0_i32 = arith.constant 0 : i32
    %c0_i32_0 = arith.constant 0 : i32
    %c0_i32_1 = arith.constant 0 : i32
    return %c0_i32, %c0_i32_0 : i32, i32
  }
  func.func @transform_7(%arg0: i32) -> (i32, i32) {
    %c0_i32 = arith.constant 0 : i32
    %c0_i32_0 = arith.constant 0 : i32
    return %arg0, %c0_i32 : i32, i32
  }
}

</mosaic_0001>

<bundles_post_ra>
// kernel: mlp_forward.1
= control target key start
LH: loop header
LB: loop body
LE: loop exit
PB: predicated region body
PF: predicated region fallthrough
CT: control target
= control target key end

     0   :  { %12 = vsyncpa [#allocation3], 0  ;;  %s632_s0 = inlined_call_operand.vmem [shape: f32[8,128], index: 0, kind: input, shape index: {}]   ;;  %s633_s1 = inlined_call_operand.hbm [shape: bf16[128,128], index: 1, kind: input, shape index: {}]   ;;  %s634_s2 = inlined_call_operand.vmem [shape: f32[1,128], index: 2, kind: input, shape index: {}]   ;;  %s635_s3 = inlined_call_operand.hbm [shape: bf16[128,128], index: 3, kind: input, shape index: {}]   ;;  %s636_s4 = inlined_call_operand.vmem [shape: f32[1,128], index: 4, kind: input, shape index: {}]   ;;  %s637_s5 = inlined_call_operand.hbm [shape: bf16[128,128], index: 5, kind: input, shape index: {}]   ;;  %s638_s6 = inlined_call_operand.vmem [shape: f32[1,128], index: 6, kind: input, shape index: {}]   ;;  %s639_s7 = inlined_call_operand.vmem [shape: f32[8,128], index: 7, kind: output, shape index: {}]  }
   0x1   :  { %13 = vsyncpa [#allocation5], 0  ;;  %s35_s26 = sshll.u32 %s635_s3, 4  ;;  %s563_s27 = smov [#allocation4]   ;;  %s36_s26 = int_to_ptr.hbm [resolvable:$true] %s35_s26 }
   0x2   :  { %s37_s28 = sshll.u32 %s563_s27, 4  ;;  %s20_s8 = sshll.u32 %s633_s1, 4  ;;  %s38_s28 = int_to_ptr.vmem [resolvable:$true] %s37_s28  ;;  %s21_s8 = int_to_ptr.hbm [resolvable:$true] %s20_s8 }
   0x3   :  { %s564_s9 = smov 64   ;;  %s565_s10 = smov 4  }
   0x4   :  { %43 = dma.hbm_to_vmem [thread:$0]  %s36_s26, 1024, %s38_s28, [#allocation5], %s564_s9, %s564_s9, %s565_s10  }
   0x5   :  { %s566_s11 = smov [#allocation2]   ;;  %s50_s15 = sshll.u32 %s637_s5, 4  ;;  %s51_s15 = int_to_ptr.hbm [resolvable:$true] %s50_s15 }
   0x6   :  { %s22_s12 = sshll.u32 %s566_s11, 4  ;;  %s567_s3 = smov [#allocation6]   ;;  %s23_s12 = int_to_ptr.vmem [resolvable:$true] %s22_s12 }
   0x7   :  { %28 = dma.hbm_to_vmem [thread:$0]  %s21_s8, 1024, %s23_s12, [#allocation3], %s564_s9, %s564_s9, %s565_s10  }
   0x8   :  { %s52_s16 = sshll.u32 %s567_s3, 4  ;;  %s53_s16 = int_to_ptr.vmem [resolvable:$true] %s52_s16 }
   0x9   :  { %58 = dma.hbm_to_vmem [thread:$0]  %s51_s15, 1024, %s53_s16, [#allocation5], %s564_s9, %s564_s9, %s565_s10  }
   0xa   :  { %559 = dma.done.wait [#allocation3], 1024  }
   0xb   :  { %560 = vsyncadd [#allocation3], 4294966272 }
   0xc   :  { %561 = dma.done.wait [#allocation5], 2048  }
   0xd   :  { %562 = vsyncadd [#allocation5], 4294965248  ;;  %v454_v0 = vld [vmem:[#allocation2 + $0x38] sm:$0xff]  ;;  %v453_v1 = vld [vmem:[#allocation2 + $0x30] sm:$0xff] }
   0xe   :  { %143 = vmatpush.bf16.msra.mxu0 %v454_v0  ;;  %v462_v2 = vld [vmem:[#allocation4 + $0x38] sm:$0xff]  ;;  %v461_v3 = vld [vmem:[#allocation4 + $0x30] sm:$0xff]  ;;  %v452_v4 = vld [vmem:[#allocation2 + $0x28] sm:$0xff] }
   0xf   :  { %226 = vmatpush.bf16.msra.mxu1 %v462_v2  ;;  %v460_v5 = vld [vmem:[#allocation4 + $0x28] sm:$0xff]  ;;  %v451_v6 = vld [vmem:[#allocation2 + $0x20] sm:$0xff]  ;;  %v450_v8 = vld [vmem:[#allocation2 + $0x18] sm:$0xff] }
  0x10   :  { %v459_v7 = vld [vmem:[#allocation4 + $0x20] sm:$0xff]  ;;  %v458_v9 = vld [vmem:[#allocation4 + $0x18] sm:$0xff]  ;;  %v449_v10 = vld [vmem:[#allocation2 + $0x10] sm:$0xff] }
  0x11   :  { %v448_v11 = vld [vmem:[#allocation2 + $0x8] sm:$0xff]  ;;  %v447_v12 = vld [vmem:[#allocation2] sm:$0xff]  ;;  %v457_v15 = vld [vmem:[#allocation4 + $0x10] sm:$0xff] }
  0x12   :  { %144 = vmatpush.bf16.msra.mxu0 %v453_v1  ;;  %v73_v13 = vld [vmem:[%s632_s0] sm:$0xff]  ;;  %v456_v16 = vld [vmem:[#allocation4 + $0x8] sm:$0xff]  ;;  %v470_v18 = vld [vmem:[#allocation6 + $0x38] sm:$0xff] }
  0x13   :  { %227 = vmatpush.bf16.msra.mxu1 %v461_v3  ;;  %v91_v14 = vpack.c.bf16 %v73_v13, %v73_v13  ;;  %v455_v17 = vld [vmem:[#allocation4] sm:$0xff]  ;;  %309 = vmatpush.bf16.msra.mxu2 %v470_v18  ;;  %v469_v19 = vld [vmem:[#allocation6 + $0x30] sm:$0xff]  ;;  %v468_v20 = vld [vmem:[#allocation6 + $0x28] sm:$0xff] }
  0x14   :  { %v467_v21 = vld [vmem:[#allocation6 + $0x20] sm:$0xff]  ;;  %v466_v22 = vld [vmem:[#allocation6 + $0x18] sm:$0xff]  ;;  %v465_v29 = vld [vmem:[#allocation6 + $0x10] sm:$0xff] }
  0x15   :  { %v476_v23 = vld [vmem:[%s634_s2] ss:$0 sm:$0xff]  ;;  %v464_v30 = vld [vmem:[#allocation6 + $0x8] sm:$0xff] }
  0x16   :  { %145 = vmatpush.bf16.msra.mxu0 %v452_v4  ;;  %v463_v31 = vld [vmem:[#allocation6] sm:$0xff] }
  0x17   :  { %228 = vmatpush.bf16.msra.mxu1 %v460_v5  ;;  %310 = vmatpush.bf16.msra.mxu2 %v469_v19  ;;  %v477_v32 = vld [vmem:[%s636_s4] ss:$0 sm:$0xff] }
  0x18   :  { %v478_v38 = vld [vmem:[%s638_s6] ss:$0 sm:$0xff] }
  0x1a   :  { %146 = vmatpush.bf16.msra.mxu0 %v451_v6 }
  0x1b   :  { %229 = vmatpush.bf16.msra.mxu1 %v459_v7  ;;  %311 = vmatpush.bf16.msra.mxu2 %v468_v20 }
  0x1e   :  { %147 = vmatpush.bf16.msra.mxu0 %v450_v8 }
  0x1f   :  { %230 = vmatpush.bf16.msra.mxu1 %v458_v9  ;;  %312 = vmatpush.bf16.msra.mxu2 %v467_v21 }
  0x22   :  { %148 = vmatpush.bf16.msra.mxu0 %v449_v10 }
  0x23   :  { %231 = vmatpush.bf16.msra.mxu1 %v457_v15  ;;  %313 = vmatpush.bf16.msra.mxu2 %v466_v22 }
  0x26   :  { %149 = vmatpush.bf16.msra.mxu0 %v448_v11 }
  0x27   :  { %232 = vmatpush.bf16.msra.mxu1 %v456_v16  ;;  %314 = vmatpush.bf16.msra.mxu2 %v465_v29 }
  0x2a   :  { %150 = vmatpush.bf16.msra.mxu0 %v447_v12 }
  0x2b   :  { %233 = vmatpush.bf16.msra.mxu1 %v455_v17  ;;  %315 = vmatpush.bf16.msra.mxu2 %v464_v30 }
  0x2d   :  { %151 = vmatmul.bf16.vlgmr.msra.gmra.mxu0 %v91_v14 }
  0x2f   :  { %316 = vmatpush.bf16.msra.mxu2 %v463_v31 }
  0xaa   :  { %v152_v24 = vpop.f32.mrf.mxu0 }
  0xab   :  { %v153_v25 = vadd.f32 %v476_v23, %v152_v24 }
  0xad   :  { %479 = vtanh.f32 %v153_v25 }
  0xb2   :  { %v154_v26 = vpop.f32.mrf.mxu0 }
  0xb3   :  { %v480_v27 = vpop.eup %479 }
  0xb4   :  { %v174_v28 = vpack.c.bf16 %v480_v27, %v480_v27 }
  0xb6   :  { %234 = vmatmul.bf16.vlgmr.msra.gmra.mxu1 %v174_v28 }
 0x133   :  { %v235_v33 = vpop.f32.mrf.mxu1 }
 0x134   :  { %v236_v34 = vadd.f32 %v477_v32, %v235_v33 }
 0x136   :  { %481 = vtanh.f32 %v236_v34 }
 0x13b   :  { %v237_v35 = vpop.f32.mrf.mxu1 }
 0x13c   :  { %v482_v36 = vpop.eup %481 }
 0x13d   :  { %v257_v37 = vpack.c.bf16 %v482_v36, %v482_v36 }
 0x13f   :  { %317 = vmatmul.bf16.vlgmr.msra.gmra.mxu2 %v257_v37 }
 0x1c2   :  { %v318_v39 = vpop.f32.mrf.mxu2 }
 0x1c3   :  { %v319_v40 = vadd.f32 %v478_v38, %v318_v39 }
 0x1c5   :  { %322 = vmax.xlane.f32.xlu0 %v319_v40 }
 0x1ca   :  { %v320_v41 = vpop.f32.mrf.mxu2 }
 0x238   :  { %v323_v42 = vpop.xlane.xlu0 %322 }
 0x239   :  { %v324_v43 = vsub.f32 %v319_v40, %v323_v42 }
 0x23b   :  { %v325_v44 = vmul.f32 1.442695, %v324_v43 }
 0x23d   :  { %483 = vpow2.f32 %v325_v44 }
 0x243   :  { %v484_v45 = vpop.eup %483 }
 0x244   :  { %327 = vadd.xlane.f32.xlu0 %v484_v45 }
 0x2b7   :  { %v328_v46 = vpop.xlane.xlu0 %327 }
 0x2b8   :  { %485 = vrcp.f32 %v328_v46  ;;  %v340_v50 = vand.u32 2147483648, %v328_v46  ;;  %v338_v52 = vand.u32 2147483647, %v328_v46  ;;  %vm334_vm1 = vweird.f32 %v328_v46 }
 0x2ba   :  { %v341_v54 = vor.u32 1.1754944e-38, %v340_v50  ;;  %vm339_vm3 = vcmp.eq.f32.partialorder %v338_v52, 8.507059e+37 }
 0x2be   :  { %v486_v47 = vpop.eup %485 }
 0x2bf   :  { %v330_v48 = vmul.f32 %v486_v47, %v328_v46  ;;  %vm335_vm0 = vweird.f32 %v486_v47 }
 0x2c0   :  { %vm336_vm2 = vmor %vm334_vm1, %vm335_vm0 }
 0x2c1   :  { %v331_v49 = vsub.f32 1.0, %v330_v48 }
 0x2c3   :  { %v332_v51 = vmul.f32 %v486_v47, %v331_v49 }
 0x2c5   :  { %v333_v53 = vadd.f32 %v486_v47, %v332_v51 }
 0x2c7   :  { %v337_v55 = vsel %vm336_vm2, %v486_v47, %v333_v53 }
 0x2c8   :  { %v342_v56 = vsel %vm339_vm3, %v341_v54, %v337_v55 }
 0x2c9   :  { %v343_v57 = vmul.f32 %v484_v45, %v342_v56 }
 0x2cb   :  { %344 = vst [vmem:[%s639_s7] sm:$0xff] %v343_v57 }
 0x2cc   :  { %349 = vsyncpa [#allocation3], 1 }
 0x2cd   :  { %350 = vsyncpa [#allocation5], 1 }

</bundles_post_ra>
